<compile_context>
chip_gen: v7x
topology: tpu7x:2x2x1
jax: 0.10.0
libtpu: 0.0.40
codegen_flags: <defaults>
</compile_context>

<pallas_src>
import functools

import jax
import jax.numpy as jnp
import numpy as np
from jax.experimental import pallas as pl
from jax.experimental.pallas import tpu as pltpu

_PAD_SCORE = 1e30  # ||c||^2 sentinel for padded codebook rows (never argmin)


def _round_up(x, m):
    return ((x + m - 1) // m) * m


# ---------------------------------------------------------------------------
# Straight-through estimator: forward value is the quantized tensor, gradient
# flows unchanged to the encoder input.  Matches `x + (x_q - x).detach()`
# without re-reading x and q and writing a third full NCHW array.
# ---------------------------------------------------------------------------
@jax.custom_vjp
def _straight_through(x, x_q):
    del x
    return x_q


def _straight_through_fwd(x, x_q):
    del x
    return x_q, None


def _straight_through_bwd(_, g):
    return g, jnp.zeros_like(g)


_straight_through.defvjp(_straight_through_fwd, _straight_through_bwd)


# ---------------------------------------------------------------------------
# Kernel
# ---------------------------------------------------------------------------
def _vq_kernel(x_ref, cbd_ref, cbt_ref, c2_ref, idx_ref, q_ref, sse_ref,
               q_acc_ref, *, sk, n_chunks, sentinel, dist_dtype):
    """One [C, tp] spatial tile: distances -> argmin -> quantize -> partial SSE.

    cbd_ref : [n_chunks, sk, C]  -2 * codebook, distance dtype (bf16 / f32)
    cbt_ref : [n_chunks, C, sk]  codebook chunks transposed, f32 (exact gather)
    c2_ref  : [n_chunks, sk, 1]  ||codebook||^2 f32 (padded rows = 1e30)
    """
    x = x_ref[0]                                    # [C, tp], input dtype
    xd = x.astype(dist_dtype)                       # distance-matmul operand
    tp = x.shape[-1]

    iota = jax.lax.broadcasted_iota(jnp.int32, (sk, tp), 0)     # hoisted

    def chunk_min(ci):
        # score = ||c||^2 - 2 x.c  (-2 pre-folded into cbd; only the
        # broadcast add of ||c||^2 is left on the VPU)
        sc = jnp.dot(cbd_ref[ci], xd, preferred_element_type=jnp.float32)
        sc = sc + c2_ref[ci]                                    # [sk, tp]
        m = jnp.min(sc, axis=0, keepdims=True)                  # [1, tp]
        a = jnp.min(jnp.where(sc == m, iota + ci * sk, sentinel),
                    axis=0, keepdims=True).astype(jnp.int32)    # first minimum
        return m, a

    best, bidx = chunk_min(0)
    if n_chunks > 1:
        def body(ci, carry):
            b, bi = carry
            m, a = chunk_min(ci)
            upd = m < b            # strict: earlier chunk wins ties (torch.min)
            return jnp.where(upd, m, b), jnp.where(upd, a, bi)

        best, bidx = jax.lax.fori_loop(1, n_chunks, body, (best, bidx))

    idx_ref[0] = bidx                                            # [1, tp]

    # Gather codebook rows as codebook^T @ one_hot.  Kept in f32 so the
    # quantized values are bit-exact codebook rows (one-hot columns only
    # multiply by exact 0/1).
    def chunk_gather(ci):
        one_hot = (iota + ci * sk == bidx).astype(jnp.float32)   # [sk, tp]
        return jnp.dot(cbt_ref[ci], one_hot,
                       preferred_element_type=jnp.float32)       # [C, tp]

    if n_chunks == 1:
        q = chunk_gather(0)
    else:
        q_acc_ref[...] = chunk_gather(0)

        def gather_body(ci, carry):
            q_acc_ref[...] += chunk_gather(ci)
            return carry

        jax.lax.fori_loop(1, n_chunks, gather_body, 0)
        q = q_acc_ref[...]

    q_ref[0] = q.astype(q_ref.dtype)

    # Per-column partial SSE for the commitment loss (reduced in the wrapper).
    diff = x.astype(jnp.float32) - q
    sse_ref[0] = jnp.sum(diff * diff, axis=0, keepdims=True)     # [1, tp]


# ---------------------------------------------------------------------------
# Planning (static, outside jit): VMEM budget & tile selection
# ---------------------------------------------------------------------------
def _vmem_capacity_bytes():
    cap = 64 * 2**20            # conservative fallback (v7x per-core VMEM)
    try:
        info = pltpu.get_tpu_info()
        cap = int(getattr(info, "vmem_capacity_bytes", 0)) or cap
    except Exception:
        pass
    return cap


def _vmem_bytes(C, s_pad, sk, tp, x_item, out_item, dist_item):
    """Rough per-invocation VMEM footprint (double-buffered blocks + temps)."""
    resident = 2 * s_pad * (C * dist_item + C * 4 + 4)      # cbd, cbt, ||c||^2
    tiles = 2 * (C * tp * (x_item + out_item) + 2 * tp * 4)  # x, q, idx, sse
    scratch = C * tp * 4                                     # q accumulator
    temps = (sk * tp * 16                       # score / iota / where / one_hot
             + C * tp * (8 + dist_item))        # f32 x & diff, cast x
    return resident + tiles + scratch + temps + (2 << 20)    # Mosaic slack


def _plan_tiles(N, C, P, S, tp_pref, sk_pref, x_item, out_item, dist_item):
    budget = int(_vmem_capacity_bytes() * 0.8)   # headroom for Mosaic internals
    fit = int(budget * 0.9)

    tp0 = max(128, (min(tp_pref, _round_up(P, 128)) // 128) * 128)
    sk0 = min(_round_up(sk_pref, 8), _round_up(S, 8))

    tp_cands = []
    t = tp0
    while True:
        tp_cands.append(t)
        if t <= 128:
            break
        t = max(128, ((t // 2) // 128) * 128)

    sk_cands = []
    s = sk0
    while True:
        sk_cands.append(s)
        if s <= 128:
            break
        s = max(8, _round_up(s // 2, 8))

    tp_sel, sk_sel = tp_cands[-1], sk_cands[-1]
    found = False
    for tp_c in tp_cands:                         # prefer large spatial tiles
        for sk_c in sk_cands:
            if _vmem_bytes(C, _round_up(S, sk_c), sk_c, tp_c,
                           x_item, out_item, dist_item) <= fit:
                tp_sel, sk_sel, found = tp_c, sk_c, True
                break
        if found:
            break
    # TODO(synk): codebooks too large to keep VMEM-resident even at the
    # smallest tiles should stream codebook chunks through a third grid axis.

    # v7x has 2 TensorCores per chip: make sure the fully-"parallel" grid has
    # at least 2 steps so both cores get work (no-op on v5e/v6e).
    while N * (_round_up(P, tp_sel) // tp_sel) < 2 and tp_sel > 128:
        tp_sel = max(128, ((tp_sel // 2) // 128) * 128)

    return tp_sel, sk_sel, budget


# ---------------------------------------------------------------------------
# Forward implementation (jitted; tiling decisions are static args)
# ---------------------------------------------------------------------------
@functools.partial(
    jax.jit, static_argnames=("tp", "sk", "dist_dtype", "vmem_limit"))
def _vq_forward_impl(x, codebook, *, tp, sk, dist_dtype, vmem_limit):
    N, C = x.shape[0], x.shape[1]
    spatial = tuple(x.shape[2:])
    P = int(np.prod(spatial)) if spatial else 1
    S = codebook.shape[0]

    p_pad = _round_up(P, tp)
    s_pad = _round_up(S, sk)
    n_chunks = s_pad // sk

    # NCHW -> [N, C, P] is a free reshape; only non-128-aligned spatial sizes
    # pay a pad copy (sliced off again below).
    x_ncp = x.reshape(N, C, P)
    if p_pad != P:
        x_ncp = jnp.pad(x_ncp, ((0, 0), (0, 0), (0, p_pad - P)))

    # Hoisted codebook prep (once, outside the grid):
    #   cbd: -2 * codebook in the distance dtype (bf16 default = native MXU);
    #   cbt: f32 transposed chunks for the exact one-hot gather;
    #   c2 : f32 ||c||^2; padded rows get a huge value so they never win.
    cb32 = codebook.astype(jnp.float32)
    c2 = jnp.sum(cb32 * cb32, axis=-1, keepdims=True)            # [S, 1]
    if s_pad != S:
        cb32 = jnp.pad(cb32, ((0, s_pad - S), (0, 0)))
        c2 = jnp.pad(c2, ((0, s_pad - S), (0, 0)), constant_values=_PAD_SCORE)
    cbd = (-2.0 * cb32).astype(dist_dtype).reshape(n_chunks, sk, C)
    cbt = cb32.reshape(n_chunks, sk, C).transpose(0, 2, 1)       # [nc, C, sk]
    c2 = c2.reshape(n_chunks, sk, 1)

    grid = (N, p_pad // tp)
    x_item = jnp.dtype(x.dtype).itemsize
    cost = pl.CostEstimate(
        flops=int(4 * N * p_pad * s_pad * C),
        transcendentals=0,
        bytes_accessed=int(2 * N * C * p_pad * x_item + 2 * N * p_pad * 4
                           + s_pad * C * (jnp.dtype(dist_dtype).itemsize + 4)
                           + s_pad * 4),
    )

    kernel = functools.partial(_vq_kernel, sk=sk, n_chunks=n_chunks,
                               sentinel=s_pad, dist_dtype=jnp.dtype(dist_dtype))

    idx_p, q_p, sse_p = pl.pallas_call(
        kernel,
        out_shape=(
            jax.ShapeDtypeStruct((N, 1, p_pad), jnp.int32),
            jax.ShapeDtypeStruct((N, C, p_pad), x.dtype),
            jax.ShapeDtypeStruct((N, 1, p_pad), jnp.float32),
        ),
        grid_spec=pltpu.PrefetchScalarGridSpec(
            num_scalar_prefetch=0,
            grid=grid,
            in_specs=[
                pl.BlockSpec((1, C, tp), lambda n, p: (n, 0, p)),         # x
                pl.BlockSpec((n_chunks, sk, C), lambda n, p: (0, 0, 0)),  # -2*cb
                pl.BlockSpec((n_chunks, C, sk), lambda n, p: (0, 0, 0)),  # cb^T
                pl.BlockSpec((n_chunks, sk, 1), lambda n, p: (0, 0, 0)),  # ||c||^2
            ],
            out_specs=[
                pl.BlockSpec((1, 1, tp), lambda n, p: (n, 0, p)),  # indices
                pl.BlockSpec((1, C, tp), lambda n, p: (n, 0, p)),  # quantized
                pl.BlockSpec((1, 1, tp), lambda n, p: (n, 0, p)),  # SSE partial
            ],
            scratch_shapes=[pltpu.VMEM((C, tp), jnp.float32)],
        ),
        compiler_params=pltpu.CompilerParams(
            dimension_semantics=("parallel", "parallel"),
            vmem_limit_bytes=int(vmem_limit),
        ),
        cost_estimate=cost,
    )(x_ncp, cbd, cbt, c2)

    if p_pad != P:
        idx_p = idx_p[:, :, :P]
        q_p = q_p[:, :, :P]
        sse_p = sse_p[:, :, :P]

    encoding_indices = idx_p[:, 0, :]                            # [N, P]
    x_quantized = q_p.reshape(x.shape)                           # NCHW
    sse = jnp.sum(sse_p)

    out = {}
    # eval / research_mode commitment loss: mean((x - stop_grad(x_q))^2)
    out["loss_commitment"] = sse / x.size
    out["codebook_indices"] = encoding_indices.reshape((N,) + spatial)
    # straight-through: forward value is x_quantized, gradient is identity to x
    out["output"] = _straight_through(x, x_quantized)
    return out


def vq_vae_ema_forward(x, codebook, *, tp=1024, sk=1024,
                       dist_dtype=jnp.bfloat16):
    """Forward pass of VQ_VAE_ema (eval / research_mode semantics).

    Args:
      x          : [N, C, ...] float array (PyTorch NCHW layout).
      codebook   : [S, C] float array.
      tp         : preferred spatial (lane) tile, multiple of 128.
      sk         : preferred codebook chunk size for the streamed argmin.
      dist_dtype : dtype fed to the distance matmul.  jnp.bfloat16 (default)
                   uses the native MXU; near-tie argmins may differ from an
                   f32 reference.  Pass jnp.float32 for bit-exact indices.
                   Quantized output values are exact codebook rows either way.
    """
    N, C = x.shape[0], x.shape[1]
    P = int(np.prod(x.shape[2:])) if x.ndim > 2 else 1
    S = codebook.shape[0]

    x_item = jnp.dtype(x.dtype).itemsize
    dist_item = jnp.dtype(dist_dtype).itemsize
    tp_eff, sk_eff, vmem_limit = _plan_tiles(
        N, C, P, S, tp, sk, x_item, x_item, dist_item)

    return _vq_forward_impl(x, codebook, tp=tp_eff, sk=sk_eff,
                            dist_dtype=jnp.dtype(dist_dtype),
                            vmem_limit=vmem_limit)


# ---------------------------------------------------------------------------
# Reference + self-tests
# ---------------------------------------------------------------------------
def _reference_forward(x, codebook):
    """Pure-JAX reference mirroring the PyTorch module (f32 distances)."""
    N, C = x.shape[0], x.shape[1]
    P = int(np.prod(x.shape[2:]))
    x_flat = x.reshape(N, C, P)
    dist = jnp.sum((x_flat[:, None] - codebook[None, ..., None]) ** 2, axis=2)
    idx = jnp.argmin(dist, axis=1)                                   # [N, P]
    x_q = jnp.transpose(codebook[idx], (0, 2, 1)).reshape(x.shape)   # NCHW
    loss = jnp.mean((x - x_q) ** 2)
    return dist, idx, x_q, loss


def _make_inputs(key, N, C, H, W, S):
    k_x, k_cb = jax.random.split(key)
    x = jax.random.normal(k_x, (N, C, H, W), dtype=jnp.float32)
    # matches torch.randn(codebook_size, in_features) / in_features
    codebook = jax.random.normal(k_cb, (S, C), dtype=jnp.float32) / C
    return x, codebook


def _check_exact(key, N, C, H, W, S, **kwargs):
    x, codebook = _make_inputs(key, N, C, H, W, S)
    out = vq_vae_ema_forward(x, codebook, dist_dtype=jnp.float32, **kwargs)
    jax.block_until_ready(out)
    _, ref_idx, ref_q, ref_loss = _reference_forward(x, codebook)
    idx = np.asarray(out["codebook_indices"].reshape(N, H * W))
    assert np.array_equal(idx, np.asarray(ref_idx)), "index mismatch (f32 mode)"
    np.testing.assert_allclose(np.asarray(out["output"]), np.asarray(ref_q),
                               rtol=1e-6, atol=1e-6)
    np.testing.assert_allclose(float(out["loss_commitment"]), float(ref_loss),
                               rtol=1e-5, atol=1e-6)


def _check_bf16(key, N, C, H, W, S, **kwargs):
    x, codebook = _make_inputs(key, N, C, H, W, S)
    out = vq_vae_ema_forward(x, codebook, **kwargs)   # default bf16 distances
    jax.block_until_ready(out)
    dist, _, _, _ = _reference_forward(x, codebook)
    dist = np.asarray(dist)                                          # [N, S, P]
    idx = np.asarray(out["codebook_indices"].reshape(N, H * W))
    picked = np.take_along_axis(dist, idx[:, None, :], axis=1)[:, 0, :]
    best = dist.min(axis=1)
    # bf16 distance scores may flip near-ties: the picked code must still be
    # (near-)optimal in true f32 distance.
    assert np.all(picked <= best + 0.1 + 0.05 * np.abs(best)), \
        float((picked - best).max())
    # quantized output must be the exact codebook rows for the picked indices
    q_expect = np.transpose(np.asarray(codebook)[idx],
                            (0, 2, 1)).reshape(x.shape)
    np.testing.assert_allclose(np.asarray(out["output"]), q_expect,
                               rtol=1e-6, atol=1e-6)
    loss_expect = float(np.mean((np.asarray(x, np.float64)
                                 - q_expect.astype(np.float64)) ** 2))
    np.testing.assert_allclose(float(out["loss_commitment"]), loss_expect,
                               rtol=1e-4, atol=1e-6)


if __name__ == "__main__":
    key = jax.random.PRNGKey(0)
    k1, k2, k3, k4 = jax.random.split(key, 4)

    # exact (f32-distance) path: bit-exact indices vs the reference
    _check_exact(k1, N=2, C=4, H=16, W=16, S=8)            # aligned, 1 chunk
    _check_exact(k2, N=2, C=4, H=14, W=14, S=12, sk=8)     # padded P & S, 2 chunks
    _check_exact(k3, N=1, C=4, H=16, W=16, S=8)            # grid split for 2 TCs

    # default bf16-distance path (native MXU): near-optimal indices, exact rows
    _check_bf16(k4, N=2, C=4, H=16, W=16, S=8)

    print("KERNEL_OK")
</pallas_src>

<mosaic_0001>
module attributes {stable_mosaic.version = 11 : i64} {
  func.func @_vq_kernel(%arg0: i32, %arg1: i32, %arg2: memref<1x4x256xf32, #tpu.memory_space<vmem>>, %arg3: memref<1x8x4xf32, #tpu.memory_space<vmem>>, %arg4: memref<1x4x8xf32, #tpu.memory_space<vmem>>, %arg5: memref<1x8x1xf32, #tpu.memory_space<vmem>>, %arg6: memref<1x1x256xi32, #tpu.memory_space<vmem>>, %arg7: memref<1x4x256xf32, #tpu.memory_space<vmem>>, %arg8: memref<1x1x256xf32, #tpu.memory_space<vmem>>, %arg9: memref<4x256xf32, #tpu.memory_space<vmem>>) attributes {dimension_semantics = [#tpu.dimension_semantics<parallel>, #tpu.dimension_semantics<parallel>], iteration_bounds = array<i64: 2, 1>, scalar_prefetch = 0 : i64, scratch_operands = 1 : i64, tpu.core_type = #tpu.core_type<tc>, window_params = [{transform_indices = @transform_0, window_bounds = array<i64: 1, 4, 256>}, {pipeline_mode = #tpu.pipeline_mode<synchronous>, transform_indices = @transform_1, window_bounds = array<i64: 1, 8, 4>}, {pipeline_mode = #tpu.pipeline_mode<synchronous>, transform_indices = @transform_2, window_bounds = array<i64: 1, 4, 8>}, {pipeline_mode = #tpu.pipeline_mode<synchronous>, transform_indices = @transform_3, window_bounds = array<i64: 1, 8, 1>}, {transform_indices = @transform_4, window_bounds = array<i64: 1, 1, 256>}, {transform_indices = @transform_5, window_bounds = array<i64: 1, 4, 256>}, {transform_indices = @transform_6, window_bounds = array<i64: 1, 1, 256>}]} {
    %c0 = arith.constant 0 : index
    %c0_0 = arith.constant 0 : index
    %c0_1 = arith.constant 0 : index
    %0 = vector.load %arg2[%c0, %c0_0, %c0_1] : memref<1x4x256xf32, #tpu.memory_space<vmem>>, vector<1x4x256xf32>
    %1 = vector.shape_cast %0 : vector<1x4x256xf32> to vector<4x256xf32>
    %2 = tpu.iota {dimensions = array<i32: 0>} : vector<8x256xi32>
    %c0_2 = arith.constant 0 : index
    %c0_3 = arith.constant 0 : index
    %c0_4 = arith.constant 0 : index
    %3 = vector.load %arg3[%c0_2, %c0_3, %c0_4] : memref<1x8x4xf32, #tpu.memory_space<vmem>>, vector<1x8x4xf32>
    %4 = vector.shape_cast %3 : vector<1x8x4xf32> to vector<8x4xf32>
    %cst = arith.constant dense<0.000000e+00> : vector<8x256xf32>
    %5 = tpu.matmul %4, %1, %cst {dimension_numbers = #tpu.dot_dimension_numbers<[1], [0], [0], [1], [0, 0, 1, 1], [], []>} : vector<8x4xf32>, vector<4x256xf32>, vector<8x256xf32> -> vector<8x256xf32>
    %c0_5 = arith.constant 0 : index
    %c0_6 = arith.constant 0 : index
    %c0_7 = arith.constant 0 : index
    %6 = vector.load %arg5[%c0_5, %c0_6, %c0_7] : memref<1x8x1xf32, #tpu.memory_space<vmem>>, vector<1x8x1xf32>
    %7 = vector.shape_cast %6 : vector<1x8x1xf32> to vector<8x1xf32>
    %8 = vector.broadcast %7 : vector<8x1xf32> to vector<8x256xf32>
    %9 = arith.addf %5, %8 : vector<8x256xf32>
    %cst_8 = arith.constant dense<0x7F800000> : vector<256xf32>
    %10 = vector.multi_reduction <minimumf>, %9, %cst_8 [0] : vector<8x256xf32> to vector<256xf32>
    %11 = vector.shape_cast %10 : vector<256xf32> to vector<1x256xf32>
    %12 = vector.broadcast %11 : vector<1x256xf32> to vector<8x256xf32>
    %13 = arith.cmpf oeq, %9, %12 : vector<8x256xf32>
    %c0_i32 = arith.constant 0 : i32
    %14 = vector.broadcast %c0_i32 : i32 to vector<8x256xi32>
    %15 = arith.addi %2, %14 : vector<8x256xi32>
    %c8_i32 = arith.constant 8 : i32
    %16 = vector.broadcast %c8_i32 : i32 to vector<8x256xi32>
    %17 = arith.select %13, %15, %16 : vector<8x256xi1>, vector<8x256xi32>
    %cst_9 = arith.constant dense<2147483647> : vector<256xi32>
    %18 = vector.multi_reduction <minsi>, %17, %cst_9 [0] : vector<8x256xi32> to vector<256xi32>
    %19 = vector.shape_cast %18 : vector<256xi32> to vector<1x256xi32>
    %c0_10 = arith.constant 0 : index
    %c0_11 = arith.constant 0 : index
    %c0_12 = arith.constant 0 : index
    %20 = vector.load %arg6[%c0_10, %c0_11, %c0_12] : memref<1x1x256xi32, #tpu.memory_space<vmem>>, vector<1x1x256xi32>
    %21 = vector.shape_cast %20 : vector<1x1x256xi32> to vector<1x256xi32>
    %22 = vector.shape_cast %19 : vector<1x256xi32> to vector<1x1x256xi32>
    tpu.vector_store %arg6[%c0_10, %c0_11, %c0_12], %22 {strides = array<i32>} : memref<1x1x256xi32, #tpu.memory_space<vmem>>, vector<1x1x256xi32>,
    %c0_i32_13 = arith.constant 0 : i32
    %23 = vector.broadcast %c0_i32_13 : i32 to vector<8x256xi32>
    %24 = arith.addi %2, %23 : vector<8x256xi32>
    %25 = vector.broadcast %19 : vector<1x256xi32> to vector<8x256xi32>
    %26 = arith.cmpi eq, %24, %25 : vector<8x256xi32>
    %27 = arith.extui %26 : vector<8x256xi1> to vector<8x256xi32>
    %28 = arith.sitofp %27 : vector<8x256xi32> to vector<8x256xf32>
    %c0_14 = arith.constant 0 : index
    %c0_15 = arith.constant 0 : index
    %c0_16 = arith.constant 0 : index
    %29 = vector.load %arg4[%c0_14, %c0_15, %c0_16] : memref<1x4x8xf32, #tpu.memory_space<vmem>>, vector<1x4x8xf32>
    %30 = vector.shape_cast %29 : vector<1x4x8xf32> to vector<4x8xf32>
    %cst_17 = arith.constant dense<0.000000e+00> : vector<4x256xf32>
    %31 = tpu.matmul %30, %28, %cst_17 {dimension_numbers = #tpu.dot_dimension_numbers<[1], [0], [0], [1], [0, 0, 1, 1], [], []>} : vector<4x8xf32>, vector<8x256xf32>, vector<4x256xf32> -> vector<4x256xf32>
    %c0_18 = arith.constant 0 : index
    %c0_19 = arith.constant 0 : index
    %c0_20 = arith.constant 0 : index
    %32 = vector.load %arg7[%c0_18, %c0_19, %c0_20] : memref<1x4x256xf32, #tpu.memory_space<vmem>>, vector<1x4x256xf32>
    %33 = vector.shape_cast %32 : vector<1x4x256xf32> to vector<4x256xf32>
    %34 = vector.shape_cast %31 : vector<4x256xf32> to vector<1x4x256xf32>
    tpu.vector_store %arg7[%c0_18, %c0_19, %c0_20], %34 {strides = array<i32>} : memref<1x4x256xf32, #tpu.memory_space<vmem>>, vector<1x4x256xf32>,
    %35 = arith.subf %1, %31 : vector<4x256xf32>
    %36 = arith.mulf %35, %35 : vector<4x256xf32>
    %cst_21 = arith.constant dense<0.000000e+00> : vector<256xf32>
    %37 = vector.multi_reduction <add>, %36, %cst_21 [0] : vector<4x256xf32> to vector<256xf32>
    %38 = vector.shape_cast %37 : vector<256xf32> to vector<1x256xf32>
    %c0_22 = arith.constant 0 : index
    %c0_23 = arith.constant 0 : index
    %c0_24 = arith.constant 0 : index
    %39 = vector.load %arg8[%c0_22, %c0_23, %c0_24] : memref<1x1x256xf32, #tpu.memory_space<vmem>>, vector<1x1x256xf32>
    %40 = vector.shape_cast %39 : vector<1x1x256xf32> to vector<1x256xf32>
    %41 = vector.shape_cast %38 : vector<1x256xf32> to vector<1x1x256xf32>
    tpu.vector_store %arg8[%c0_22, %c0_23, %c0_24], %41 {strides = array<i32>} : memref<1x1x256xf32, #tpu.memory_space<vmem>>, vector<1x1x256xf32>,
    return
  }
  func.func @transform_0(%arg0: i32, %arg1: i32) -> (i32, i32, i32) {
    %c0_i32 = arith.constant 0 : i32
    %c0_i32_0 = arith.constant 0 : i32
    return %arg0, %c0_i32, %arg1 : i32, i32, i32
  }
  func.func @transform_1(%arg0: i32, %arg1: i32) -> (i32, i32, i32) {
    %c0_i32 = arith.constant 0 : i32
    %c0_i32_0 = arith.constant 0 : i32
    %c0_i32_1 = arith.constant 0 : i32
    %c0_i32_2 = arith.constant 0 : i32
    return %c0_i32, %c0_i32_0, %c0_i32_1 : i32, i32, i32
  }
  func.func @transform_2(%arg0: i32, %arg1: i32) -> (i32, i32, i32) {
    %c0_i32 = arith.constant 0 : i32
    %c0_i32_0 = arith.constant 0 : i32
    %c0_i32_1 = arith.constant 0 : i32
    %c0_i32_2 = arith.constant 0 : i32
    return %c0_i32, %c0_i32_0, %c0_i32_1 : i32, i32, i32
  }
  func.func @transform_3(%arg0: i32, %arg1: i32) -> (i32, i32, i32) {
    %c0_i32 = arith.constant 0 : i32
    %c0_i32_0 = arith.constant 0 : i32
    %c0_i32_1 = arith.constant 0 : i32
    %c0_i32_2 = arith.constant 0 : i32
    return %c0_i32, %c0_i32_0, %c0_i32_1 : i32, i32, i32
  }
  func.func @transform_4(%arg0: i32, %arg1: i32) -> (i32, i32, i32) {
    %c0_i32 = arith.constant 0 : i32
    %c0_i32_0 = arith.constant 0 : i32
    return %arg0, %c0_i32, %arg1 : i32, i32, i32
  }
  func.func @transform_5(%arg0: i32, %arg1: i32) -> (i32, i32, i32) {
    %c0_i32 = arith.constant 0 : i32
    %c0_i32_0 = arith.constant 0 : i32
    return %arg0, %c0_i32, %arg1 : i32, i32, i32
  }
  func.func @transform_6(%arg0: i32, %arg1: i32) -> (i32, i32, i32) {
    %c0_i32 = arith.constant 0 : i32
    %c0_i32_0 = arith.constant 0 : i32
    return %arg0, %c0_i32, %arg1 : i32, i32, i32
  }
}

</mosaic_0001>

<bundles_post_ra>
// kernel: squeeze.1
= control target key start
LH: loop header
LB: loop body
LE: loop exit
PB: predicated region body
PF: predicated region fallthrough
CT: control target
= control target key end

     0   :  { %s149_s0 = inlined_call_operand.vmem [shape: s32[2,256], index: 0, kind: input, shape index: {}]   ;;  %s150_s1 = inlined_call_operand.hbm [shape: s32[2,16,16], index: 1, kind: output, shape index: {}]  }
   0x1   :  { %v71_v0 = vld [vmem:[%s149_s0 + $0x2] sm:$0x3]  ;;  %v9_v1 = vld [vmem:[%s149_s0] sm:$0x3] }
   0x2   :  { %8 = vst [vmem:[#allocation2 + $0x8] sm:$0x3] %v71_v0  ;;  %10 = vst [vmem:[#allocation2] sm:$0x3] %v9_v1 }
   0x3   :  { %2 = vsyncpa [#allocation1], 0  ;;  %vm12_vm0 = vcmask 130048   ;;  %s104_s0 = smov 112   ;;  %s105_s10 = smov 80  }
   0x4   :  { %s106_s11 = smov 96   ;;  %s107_s12 = smov 64  }
   0x5   :  { %s108_s13 = smov 48   ;;  %s109_s14 = smov 32  }
   0x6   :  { %s110_s15 = smov 16   ;;  %s111_s16 = smov [#allocation0]  }
   0x7   :  { %s65_s17 = sshll.u32 %s111_s16, 4  ;;  %s66_s17 = int_to_ptr.vmem [resolvable:$true] %s65_s17 }
   0x8   :  { %s80_s18 = scalar_lea.vmem %s66_s17, 512  ;;  %p85_p1 = scmp.lt.s32.totalorder %s66_s17, %s66_s17 }
   0x9   :  { %v19_v2 = vld.sshfl [vmem:[#allocation2] sm:$0xff pattern:$0x99999180]   ;;  %p81_p0 = scmp.ne.s32.totalorder %s66_s17, %s80_s18  ;;  %p86_p2 = scmp.lt.s32.totalorder %s80_s18, %s80_s18 }
   0xa   :  { %v11_v3 = vld [vmem:[#allocation2] sm:$0x3]   ;;  %20 = vrot.lane.b32.xlu0 %v19_v2, %s104_s0  ;;  %32 = vrot.lane.b32.xlu1 %v19_v2, %s105_s10  ;;  %v15_v4 = vld [vmem:[#allocation2 + $0x8] sm:$0x3]  }
   0xb   :  { %13 = vst.msk [vmem:[#allocation0] ss:$16 sm:$0x3] %vm12_vm0, %v11_v3   ;;  %18 = vst.msk [vmem:[#allocation0 + $0x8] ss:$16 sm:$0x3] %vm12_vm0, %v15_v4   ;;  %p87_p3 = por %p86_p2, %p85_p1 }
   0xd   :  { %p88_p4 = pnand %p87_p3, %p81_p0 }
   0xe   :  { %26 = vrot.lane.b32.xlu0 %v19_v2, %s106_s11  ;;  %38 = vrot.lane.b32.xlu1 %v19_v2, %s107_s12 }
  0x12   :  { %44 = vrot.lane.b32.xlu0 %v19_v2, %s108_s13  ;;  %50 = vrot.lane.b32.xlu1 %v19_v2, %s109_s14 }
  0x16   :  { %56 = vrot.lane.b32.xlu0 %v19_v2, %s110_s15 }
  0x7c   :  { %v21_v5 = vpop.permute.xlu0 %20   ;;  %v33_v6 = vpop.permute.xlu1 %32  }
  0x7d   :  { %24 = vst.msk [vmem:[#allocation0 + $0x1] ss:$8 sm:$0xf] %vm12_vm0, %v21_v5   ;;  %36 = vst.msk [vmem:[#allocation0 + $0x3] ss:$8 sm:$0xf] %vm12_vm0, %v33_v6  }
  0x80   :  { %v27_v7 = vpop.permute.xlu0 %26   ;;  %v39_v8 = vpop.permute.xlu1 %38  }
  0x81   :  { %30 = vst.msk [vmem:[#allocation0 + $0x2] ss:$8 sm:$0xf] %vm12_vm0, %v27_v7   ;;  %42 = vst.msk [vmem:[#allocation0 + $0x4] ss:$8 sm:$0xf] %vm12_vm0, %v39_v8  }
  0x84   :  { %v45_v9 = vpop.permute.xlu0 %44   ;;  %v51_v10 = vpop.permute.xlu1 %50  }
  0x85   :  { %48 = vst.msk [vmem:[#allocation0 + $0x5] ss:$8 sm:$0xf] %vm12_vm0, %v45_v9   ;;  %54 = vst.msk [vmem:[#allocation0 + $0x6] ss:$8 sm:$0xf] %vm12_vm0, %v51_v10  }
  0x88   :  { %v57_v11 = vpop.permute.xlu0 %56  }
  0x89   :  { %60 = vst.msk [vmem:[#allocation0 + $0x7] ss:$8 sm:$0xf] %vm12_vm0, %v57_v11  }
  0x8a   :  { %91 = shalt.err (!%p88_p4)
}
  0x8b   :  { %s92_s21 = scalar_lea.hbm %s150_s1, 512 }
  0x8c   :  { %p93_p5 = scmp.ne.s32.totalorder %s150_s1, %s92_s21  ;;  %p96_p6 = scmp.lt.u32.totalorder %s92_s21, %s150_s1 }
  0x8e   :  { %p98_p7 = pnand %p96_p6, %p93_p5 }
  0x90   :  { %101 = shalt.err (!%p98_p7)
}
  0x91   :  { %68 = dma.vmem_to_hbm [thread:$0]  %s66_s17, 512, %s150_s1, [#allocation1]  }
  0x92   :  { %102 = dma.done.wait [#allocation1], 512  }
  0x93   :  { %103 = vsyncadd [#allocation1], 4294966784 }
  0x94   :  { %70 = vsyncpa [#allocation1], 1 }

// kernel: _vq_forward_impl.1
= control target key start
LH: loop header
LB: loop body
LE: loop exit
PB: predicated region body
PF: predicated region fallthrough
CT: control target
= control target key end

     0   :  { %s896_s21 = smov 0   ;;  %s898_s22 = smov 0   ;;  %s974_s0 = inlined_call_operand.vmem [shape: f32[2,4,256], index: 0, kind: input, shape index: {}]   ;;  %s975_s1 = inlined_call_operand.vmem [shape: f32[1,8,4], index: 1, kind: input, shape index: {}]   ;;  %s976_s2 = inlined_call_operand.vmem [shape: f32[1,4,8], index: 2, kind: input, shape index: {}]   ;;  %s977_s3 = inlined_call_operand.vmem [shape: f32[1,8,1], index: 3, kind: input, shape index: {}]   ;;  %s978_s4 = inlined_call_operand.vmem [shape: s32[2,1,256], index: 4, kind: output, shape index: {0}]   ;;  %s979_s5 = inlined_call_operand.vmem [shape: f32[2,4,256], index: 5, kind: output, shape index: {1}]   ;;  %s980_s6 = inlined_call_operand.vmem [shape: f32[2,1,256], index: 6, kind: output, shape index: {2}]  }
   0x1   :  { %s900_s23 = smov 0  }
   0x2 LB: > { %s29_s24 = sadd.s32 1, %s851_s22  ;;  %p784_p0 = scmp.ge.s32.totalorder %s855_s23, 1  ;;  %s855_s23 = sphi %s900_s23, %s17_s23   ;;  %s851_s22 = sphi %s898_s22, %s984_s22   ;;  %s847_s21 = sphi %s896_s21, %s983_s21  }
   0x3   : > { %p31_p1 = scmp.ge.s32.totalorder %s29_s24, 2  ;;  %p242_p2 = scmp.lt.s32.totalorder %s855_s23, 3 }
   0x5   : > { %s986_s24 = smov (%p31_p1, %s29_s24), 0  ;;  %p243_p3 = pnand %p784_p0, %p242_p2 }
   0x6   : > { %p297_p4 = scmp.lt.s32.totalorder (!%p243_p3), %s847_s21, 1  ;;  %v857_v0 = vmov (!%p243_p3), 0.0   ;;  %v858_v1 = vmov (!%p243_p3), 0   ;;  %v338_v2 = vld [vmem:[%s977_s3] sm:$0xff] (!%p243_p3)  ;;  %vm350_vm0 = vcmask (!%p243_p3), 1043456   ;;  %vm346_vm1 = vcmask (!%p243_p3), 31744  }
   0x7   : > { %246 = sbr.rel (%p243_p3) target bundleno = 507 (0x1fb), region = 36  ;;  %419 = vmatprep.mubr.f32.mxu0 (!%p243_p3), %v857_v0  ;;  %831 = vset.pattern.permute.xlu0 (!%p243_p3), %v858_v1  ;;  %v337_v5 = vld [vmem:[%s975_s1] sm:$0xff] (!%p243_p3)  ;;  %v335_v16 = vlaneseq (!%p243_p3)  ;;  %v859_v30 = vmov (!%p243_p3), 1966171168   ;;  %vm487_vm11 = vcmask (!%p243_p3), 64512   ;;  %v860_v45 = vmov (!%p243_p3), 1.0  }
   0x8   : > { %341 = vperm.xlu0 (!%p243_p3), %831, %v338_v2   ;;  %555 = vmatprep.mubr.f32.mxu1 (!%p243_p3), %v857_v0  ;;  %v462_v31 = vunpack.c.l.s4 (!%p243_p3), %v859_v30  ;;  %v486_v44 = vld [vmem:[%s976_s2] sm:$0xf] (!%p243_p3) }
   0x9   : > { %v336_v21 = vshrl.u32 (!%p243_p3), %v335_v16, 7  ;;  %vm944_vm13 = vcmp.lt.s32.totalorder (!%p243_p3), %v335_v16, 256 }
   0xa   : > { %v463_v36 = vunpack.c.0.s8 (!%p243_p3), %v462_v31 }
   0xc   : > { %v466_v41 = vsub.s32 (!%p243_p3), %v463_v36, %v336_v21 }
   0xe   : > { %s988_s21 = smov (!%p297_p4, %s847_s21), 1 }
   0xf   : > { %s801_s27 = sshll.u32 %s988_s21, 3  ;;  %s787_s9 = sshll.u32 %s988_s21, 1 }
  0x10   : > { %s304_s30 = scalar_lea.vmem %s974_s0, %s801_s27  ;;  %s313_s14 = scalar_lea.vmem %s978_s4, %s787_s9 }
  0x11   : > { %v925_v3 = vld [vmem:[%s304_s30] sm:$0xff]  ;;  %s323_s17 = scalar_lea.vmem %s979_s5, %s801_s27  ;;  %s332_s20 = scalar_lea.vmem %s980_s6, %s787_s9 }
  0x12   : > { %v345_v4 = vcombine.high %v925_v3, %v925_v3 }
  0x14   : > { %791 = vmatprep.subr.msk.mxu0 %vm350_vm0, %v345_v4 }
  0x15   : > { %792 = vmatpush1.msk.msra.mxu0 %vm350_vm0, %v925_v3 }
  0x16   : > { %793 = vmatmul.mubr.msk.f32.vlgmr.msra.gmra.mrb[0].mxu0 %vm346_vm1, %v337_v5 }
  0x87   : > { %v342_v6 = vpop.permute.xlu0 %341 }
  0xe9   : > { %v421_v7 = vpop.f32.mrb[0].mxu0 }
  0xea   : > { %v422_v8 = vadd.f32 %v421_v7, %v342_v6  ;;  %v423_v9 = vpop.f32.mrb[1].mxu0 }
  0xeb   : > { %v424_v10 = vadd.f32 %v423_v9, %v342_v6 }
  0xec   : > { %v426_v11 = vrot.slane %v422_v8, 4 }
  0xed   : > { %v432_v12 = vrot.slane %v424_v10, 4 }
  0xee   : > { %v427_v13 = vmin.f32 %v422_v8, %v426_v11 }
  0xef   : > { %v433_v14 = vmin.f32 %v424_v10, %v432_v12 }
  0xf0   : > { %v428_v15 = vrot.slane %v427_v13, 2 }
  0xf1   : > { %v434_v17 = vrot.slane %v433_v14, 2 }
  0xf2   : > { %v429_v18 = vmin.f32 %v427_v13, %v428_v15 }
  0xf3   : > { %v435_v19 = vmin.f32 %v433_v14, %v434_v17 }
  0xf4   : > { %v430_v20 = vrot.slane %v429_v18, 1 }
  0xf5   : > { %v436_v22 = vrot.slane %v435_v19, 1 }
  0xf6   : > { %v431_v23 = vmin.f32 %v429_v18, %v430_v20 }
  0xf7   : > { %v437_v24 = vmin.f32 %v435_v19, %v436_v22 }
  0xf8   : > { %vm438_vm2 = vcmp.eq.f32.partialorder %v422_v8, %v431_v23 }
  0xf9   : > { %v440_v25 = vsel %vm438_vm2, %v336_v21, 8  ;;  %vm439_vm3 = vcmp.eq.f32.partialorder %v424_v10, %v437_v24 }
  0xfa   : > { %v442_v26 = vrot.slane %v440_v25, 4  ;;  %v441_v27 = vsel %vm439_vm3, %v336_v21, 8 }
  0xfb   : > { %v451_v28 = vrot.slane %v441_v27, 4 }
  0xfc   : > { %vm443_vm4 = vcmp.lt.s32.totalorder %v440_v25, %v442_v26 }
  0xfd   : > { %v444_v29 = vsel %vm443_vm4, %v440_v25, %v442_v26  ;;  %vm452_vm5 = vcmp.lt.s32.totalorder %v441_v27, %v451_v28 }
  0xfe   : > { %v445_v32 = vrot.slane %v444_v29, 2  ;;  %v453_v33 = vsel %vm452_vm5, %v441_v27, %v451_v28 }
  0xff   : > { %v454_v34 = vrot.slane %v453_v33, 2 }
 0x100   : > { %vm446_vm6 = vcmp.lt.s32.totalorder %v444_v29, %v445_v32 }
 0x101   : > { %v447_v35 = vsel %vm446_vm6, %v444_v29, %v445_v32  ;;  %vm455_vm7 = vcmp.lt.s32.totalorder %v453_v33, %v454_v34 }
 0x102   : > { %v448_v37 = vrot.slane %v447_v35, 1  ;;  %v456_v38 = vsel %vm455_vm7, %v453_v33, %v454_v34 }
 0x103   : > { %v457_v39 = vrot.slane %v456_v38, 1 }
 0x104   : > { %vm449_vm8 = vcmp.lt.s32.totalorder %v447_v35, %v448_v37 }
 0x105   : > { %v450_v40 = vsel %vm449_vm8, %v447_v35, %v448_v37  ;;  %vm458_vm9 = vcmp.lt.s32.totalorder %v456_v38, %v457_v39 }
 0x106   : > { %v459_v42 = vsel %vm458_vm9, %v456_v38, %v457_v39  ;;  %vm480_vm12 = vcmp.eq.s32.totalorder %v336_v21, %v450_v40 }
 0x107   : > { %v460_v43 = vcombine.low %v450_v40, %v459_v42  ;;  %vm481_vm10 = vcmp.eq.s32.totalorder %v336_v21, %v459_v42 }
 0x108   : > { %796 = vmatprep.subr.msk.mxu1 %vm481_vm10, %v860_v45 }
 0x109   : > { %v467_v46 = vrot.slane %v460_v43, %v466_v41  ;;  %797 = vmatpush1.msk.msra.mxu1 %vm480_vm12, %v860_v45 }
 0x10a   : > { %798 = vmatmul.mubr.msk.f32.vlgmr.msra.gmra.mrb[0].mxu1 %vm487_vm11, %v486_v44 }
 0x10b   : > { %v474_v48 = vrot.slane %v467_v46, %v466_v41 }
 0x10d   : > { %479 = vst.msk [vmem:[%s313_s14] sm:$0x3] %vm944_vm13, %v474_v48 }
 0x1dd   : > { %v557_v49 = vpop.f32.mrb[0].mxu1 }
 0x1de   : > { %v559_v50 = vpop.f32.mrb[1].mxu1 }
 0x1df   : > { %v564_v51 = vcombine.low %v557_v49, %v559_v50 }
 0x1e1   : > { %566 = vst [vmem:[%s323_s17] sm:$0xff] %v564_v51  ;;  %v567_v52 = vsub.f32 %v925_v3, %v564_v51 }
 0x1e3   : > { %v568_v53 = vmul.f32 %v567_v52, %v567_v52 }
 0x1e5   : > { %v570_v54 = vcombine.high %v568_v53, %v568_v53  ;;  %v572_v55 = vsel %vm350_vm0, %v568_v53, 0.0 }
 0x1e6   : > { %v573_v56 = vrot.slane %v572_v55, 4 }
 0x1e7   : > { %v579_v57 = vsel %vm350_vm0, %v570_v54, 0.0 }
 0x1e8   : > { %v574_v58 = vadd.f32 %v573_v56, %v572_v55  ;;  %v580_v59 = vrot.slane %v579_v57, 4 }
 0x1ea   : > { %v575_v60 = vrot.slane %v574_v58, 2  ;;  %v581_v61 = vadd.f32 %v580_v59, %v579_v57 }
 0x1ec   : > { %v576_v62 = vadd.f32 %v575_v60, %v574_v58  ;;  %v582_v63 = vrot.slane %v581_v61, 2 }
 0x1ee   : > { %v577_v0 = vrot.slane %v576_v62, 1  ;;  %v583_v1 = vadd.f32 %v582_v63, %v581_v61 }
 0x1f0   : > { %v584_v2 = vrot.slane %v583_v1, 1  ;;  %v578_v4 = vadd.f32 %v577_v0, %v576_v62 }
 0x1f2   : > { %v585_v5 = vadd.f32 %v584_v2, %v583_v1 }
 0x1f4   : > { %v588_v3 = vcombine.low %v578_v4, %v585_v5 }
 0x1f6   : > { %v595_v6 = vrot.slane %v588_v3, %v466_v41 }
 0x1f8   : > { %v602_v7 = vrot.slane %v595_v6, %v466_v41 }
 0x1fa   : > { %604 = vst.msk [vmem:[%s332_s20] sm:$0x3] %vm944_vm13, %v602_v7 }
 0x1fb PF: > { %s17_s23 = sadd.s32 1, %s855_s23   ;;  %s983_s21 = smov %s851_s22 }
 0x1fc   : > { %p14_p5 = scmp.ge.s32.totalorder %s17_s23, 4   ;;  %s984_s22 = smov %s986_s24 }
 0x1fe   :  { %16 = sbr.rel (!%p14_p5) target bundleno = 2 (0x2), region = 90 }

</bundles_post_ra>
